<compile_context>
chip_gen: v5e
topology: v5e:2x2
jax: 0.10.0
libtpu: 0.0.40
codegen_flags: <defaults>
</compile_context>

<pallas_src>
import functools
import math

import jax
import jax.numpy as jnp
from jax.experimental import pallas as pl
from jax.experimental.pallas import tpu as pltpu

_LANE = 128
_SUBLANE = 8
# 4096-row blocks: mean f32 (2 MiB) + std bf16 (1 MiB) + eps f32 (2 MiB) +
# out f32 (2 MiB) = 7 MiB, x2 double-buffered = 14 MiB.  Fits every generation
# once the scoped VMEM limit is raised (v5e/v6e 128 MiB physical, v7x 64 MiB).
_SAMPLE_BLOCK_ROWS = 4096
_VMEM_LIMIT_BYTES = 48 * 1024 * 1024


def _round_up(x, m):
    return ((x + m - 1) // m) * m


# ---------------------------------------------------------------------------
# Kernel 1: SWAG diagonal sample (elementwise over the flattened parameter vec)
#   out = mean + sqrt(scale) * std * eps      (std precomputed, bf16)
# ---------------------------------------------------------------------------
def swag_sample_kernel(mean_ref, std_ref, eps_ref, out_ref, *, scale_sqrt):
    out_ref[...] = (mean_ref[...]
                    + scale_sqrt * std_ref[...].astype(jnp.float32) * eps_ref[...])


def swag_sample_flat(mean2d, std2d_bf16, eps2d, *, scale=1.0):
    """mean2d/eps2d: [rows,128] f32, std2d_bf16: [rows,128] bf16, rows % 16 == 0."""
    rows, lane = mean2d.shape
    block_rows = min(_SAMPLE_BLOCK_ROWS, rows)
    spec = pl.BlockSpec((block_rows, lane), lambda i: (i, 0))
    out2d = pl.pallas_call(
        functools.partial(swag_sample_kernel, scale_sqrt=float(scale) ** 0.5),
        out_shape=jax.ShapeDtypeStruct((rows, lane), jnp.float32),
        grid=(pl.cdiv(rows, block_rows),),
        in_specs=[spec, spec, spec],
        out_specs=spec,
        compiler_params=pltpu.CompilerParams(
            dimension_semantics=("parallel",),
            vmem_limit_bytes=_VMEM_LIMIT_BYTES),
    )(mean2d, std2d_bf16, eps2d)
    return out2d.reshape(-1)


# ---------------------------------------------------------------------------
# Kernel 2: base-network forward (Linear -> ReLU -> Linear)
#   lane-dense 128-padded operands, pre-cast bf16 resident weights,
#   bf16 MXU matmuls with f32 accumulation, parallel batch grid axis.
# ---------------------------------------------------------------------------
def mlp_forward_kernel(x_ref, w1_ref, b1_ref, w2_ref, b2_ref, o_ref):
    bf16 = jnp.bfloat16
    x = x_ref[...].astype(bf16)
    h = jnp.dot(x, w1_ref[...], preferred_element_type=jnp.float32) + b1_ref[...]
    h = jnp.maximum(h, 0.0)                                       # ReLU
    y = jnp.dot(h.astype(bf16), w2_ref[...],
                preferred_element_type=jnp.float32) + b2_ref[...]
    o_ref[...] = y


def mlp_forward(x, w1_bf16, b1_f32, w2_bf16, b2_f32, d_out, *, tile_b=256):
    """Weights are already 128-padded; w* are bf16, biases f32 shaped (1, N)."""
    B, d_in = x.shape
    d_in_p, h_p = w1_bf16.shape
    d_out_p = w2_bf16.shape[1]
    b_p = _round_up(B, _SUBLANE)
    tile_b = min(tile_b, b_p)   # 256 fills the 256-wide MXU on v6e/v7x; on v5e
                                # any multiple of 128 is equivalent MXU-wise.
    x_p = jnp.pad(x, ((0, b_p - B), (0, d_in_p - d_in)))

    # Weights/biases use constant index_maps so they stay VMEM-resident.
    # (A single-buffer pipeline_mode for these constant blocks would shave a
    #  little VMEM; omitted to keep the call maximally portable.)
    out = pl.pallas_call(
        mlp_forward_kernel,
        out_shape=jax.ShapeDtypeStruct((b_p, d_out_p), jnp.float32),
        grid=(pl.cdiv(b_p, tile_b),),
        in_specs=[
            pl.BlockSpec((tile_b, d_in_p), lambda i: (i, 0)),
            pl.BlockSpec((d_in_p, h_p), lambda i: (0, 0)),
            pl.BlockSpec((1, h_p), lambda i: (0, 0)),
            pl.BlockSpec((h_p, d_out_p), lambda i: (0, 0)),
            pl.BlockSpec((1, d_out_p), lambda i: (0, 0)),
        ],
        out_specs=pl.BlockSpec((tile_b, d_out_p), lambda i: (i, 0)),
        compiler_params=pltpu.CompilerParams(
            dimension_semantics=("parallel",),
            vmem_limit_bytes=_VMEM_LIMIT_BYTES),
    )(x_p, w1_bf16, b1_f32, w2_bf16, b2_f32)
    return out[:B, :d_out]


# ---------------------------------------------------------------------------
# Kernel 3: fused SWAG sample + MLP forward (no weight HBM round trip).
#   Stats/eps are resident (constant index_map); the sample is re-derived per
#   batch tile (cheap, deterministic, megacore-safe).  Writing the sampled
#   weights back to HBM is optional.
# ---------------------------------------------------------------------------
def swag_fused_kernel(x_ref,
                      m_w1, s_w1, e_w1, m_b1, s_b1, e_b1,
                      m_w2, s_w2, e_w2, m_b2, s_b2, e_b2,
                      *out_refs, scale_sqrt, return_sample):
    if return_sample:
        y_ref, w1_out, b1_out, w2_out, b2_out = out_refs
    else:
        (y_ref,) = out_refs
    bf16 = jnp.bfloat16

    def draw(m_ref, s_ref, e_ref):
        return m_ref[...] + scale_sqrt * s_ref[...].astype(jnp.float32) * e_ref[...]

    w1 = draw(m_w1, s_w1, e_w1)            # (D_in_p, H_p) f32
    b1 = draw(m_b1, s_b1, e_b1)            # (1, H_p) f32
    w2 = draw(m_w2, s_w2, e_w2)            # (H_p, D_out_p) f32
    b2 = draw(m_b2, s_b2, e_b2)            # (1, D_out_p) f32

    if return_sample:
        w1_out[...] = w1
        b1_out[...] = b1
        w2_out[...] = w2
        b2_out[...] = b2

    x = x_ref[...].astype(bf16)
    h = jnp.dot(x, w1.astype(bf16), preferred_element_type=jnp.float32) + b1
    h = jnp.maximum(h, 0.0)
    y = jnp.dot(h.astype(bf16), w2.astype(bf16),
                preferred_element_type=jnp.float32) + b2
    y_ref[...] = y


def swag_fused_sample_forward(x, padded_stats, eps, dims, *, scale=1.0,
                              tile_b=256, return_sample=True):
    d_in, h_dim, d_out = dims
    m_w1, s_w1 = padded_stats["w1"]
    m_b1, s_b1 = padded_stats["b1"]
    m_w2, s_w2 = padded_stats["w2"]
    m_b2, s_b2 = padded_stats["b2"]
    d_in_p, h_p = m_w1.shape
    d_out_p = m_w2.shape[1]

    B = x.shape[0]
    b_p = _round_up(B, _SUBLANE)
    tile_b = min(tile_b, b_p)
    x_p = jnp.pad(x, ((0, b_p - B), (0, d_in_p - d_in)))

    kernel = functools.partial(swag_fused_kernel,
                               scale_sqrt=float(scale) ** 0.5,
                               return_sample=return_sample)

    def resident(shape):
        return pl.BlockSpec(shape, lambda i: (0,) * len(shape))

    out_shapes = [jax.ShapeDtypeStruct((b_p, d_out_p), jnp.float32)]
    out_specs = [pl.BlockSpec((tile_b, d_out_p), lambda i: (i, 0))]
    if return_sample:
        out_shapes += [jax.ShapeDtypeStruct((d_in_p, h_p), jnp.float32),
                       jax.ShapeDtypeStruct((1, h_p), jnp.float32),
                       jax.ShapeDtypeStruct((h_p, d_out_p), jnp.float32),
                       jax.ShapeDtypeStruct((1, d_out_p), jnp.float32)]
        out_specs += [resident((d_in_p, h_p)), resident((1, h_p)),
                      resident((h_p, d_out_p)), resident((1, d_out_p))]

    # Constant-index sampled-weight outputs force the batch axis serial; the
    # latency path (return_sample=False) keeps it "parallel" for v7x megacore.
    semantics = ("arbitrary",) if return_sample else ("parallel",)

    outs = pl.pallas_call(
        kernel,
        out_shape=tuple(out_shapes),
        grid=(pl.cdiv(b_p, tile_b),),
        in_specs=[
            pl.BlockSpec((tile_b, d_in_p), lambda i: (i, 0)),
            resident((d_in_p, h_p)), resident((d_in_p, h_p)), resident((d_in_p, h_p)),
            resident((1, h_p)), resident((1, h_p)), resident((1, h_p)),
            resident((h_p, d_out_p)), resident((h_p, d_out_p)), resident((h_p, d_out_p)),
            resident((1, d_out_p)), resident((1, d_out_p)), resident((1, d_out_p)),
        ],
        out_specs=tuple(out_specs),
        compiler_params=pltpu.CompilerParams(
            dimension_semantics=semantics,
            vmem_limit_bytes=_VMEM_LIMIT_BYTES),
    )(x_p, m_w1, s_w1, eps["w1"], m_b1, s_b1, eps["b1"],
      m_w2, s_w2, eps["w2"], m_b2, s_b2, eps["b2"])

    if not return_sample:
        (y_p,) = outs
        return y_p[:B, :d_out], None, None

    y_p, w1_p, b1_p, w2_p, b2_p = outs
    sampled = {
        "w1": w1_p[:d_in, :h_dim],
        "b1": b1_p[0, :h_dim],
        "w2": w2_p[:h_dim, :d_out],
        "b2": b2_p[0, :d_out],
    }
    padded = {"w1": w1_p, "b1": b1_p, "w2": w2_p, "b2": b2_p}
    return y_p[:B, :d_out], sampled, padded


# ---------------------------------------------------------------------------
# SWAG wrapper (plain-JAX glue: one-time flatten/pad + std precompute)
# ---------------------------------------------------------------------------
class SWAGPallas:
    """Mirrors SWAG with no_cov_mat=True over a 2-layer MLP base model."""

    def __init__(self, param_shapes, key, var_clamp=1e-30):
        self.var_clamp = float(var_clamp)
        self.param_shapes = dict(param_shapes)
        self.names = list(self.param_shapes.keys())

        # Deterministic synthetic SWAG statistics (stand-in for collect_model()):
        #   *_mean ~ N(0, 0.1);  *_sq_mean = mean^2 + positive variance.
        self.mean = {}
        self.sq_mean = {}
        for name, shape in self.param_shapes.items():
            key, k1, k2 = jax.random.split(key, 3)
            m = 0.1 * jax.random.normal(k1, shape, dtype=jnp.float32)
            v = 1e-3 + 0.01 * jax.random.uniform(k2, shape, dtype=jnp.float32)
            self.mean[name] = m
            self.sq_mean[name] = m * m + v

        # One-time flatten + std precompute + lane/sublane pad of the stats
        # (amortized over all sample() calls; std streamed as bf16).
        self.sizes = {n: int(math.prod(self.param_shapes[n])) for n in self.names}
        self.total = sum(self.sizes.values())
        mean_flat = jnp.concatenate([self.mean[n].reshape(-1) for n in self.names])
        sq_flat = jnp.concatenate([self.sq_mean[n].reshape(-1) for n in self.names])
        std_flat = jnp.sqrt(jnp.maximum(sq_flat - mean_flat * mean_flat,
                                        self.var_clamp))
        n_pad = _round_up(self.total, 2 * _SUBLANE * _LANE)  # bf16 sublane pack
        self._rows = n_pad // _LANE
        self._mean2d = jnp.pad(mean_flat, (0, n_pad - self.total)).reshape(-1, _LANE)
        self._std2d = jnp.pad(std_flat, (0, n_pad - self.total)).reshape(
            -1, _LANE).astype(jnp.bfloat16)

        # Per-parameter 128-padded (mean f32, std bf16) for the fused kernel.
        d_in, h_dim = self.param_shapes["w1"]
        d_out = self.param_shapes["w2"][1]
        d_in_p, h_p, d_out_p = (_round_up(d, _LANE) for d in (d_in, h_dim, d_out))
        self._dims = (d_in, h_dim, d_out)
        self._dims_p = (d_in_p, h_p, d_out_p)

        def pad2d(a, r, c):
            return jnp.pad(a, ((0, r - a.shape[0]), (0, c - a.shape[1])))

        def pad_row(a, c):
            return jnp.pad(a.reshape(1, -1), ((0, 0), (0, c - a.shape[0])))

        def std_of(name):
            return jnp.sqrt(jnp.maximum(
                self.sq_mean[name] - self.mean[name] ** 2, self.var_clamp))

        self._padded_stats = {
            "w1": (pad2d(self.mean["w1"], d_in_p, h_p),
                   pad2d(std_of("w1"), d_in_p, h_p).astype(jnp.bfloat16)),
            "b1": (pad_row(self.mean["b1"], h_p),
                   pad_row(std_of("b1"), h_p).astype(jnp.bfloat16)),
            "w2": (pad2d(self.mean["w2"], h_p, d_out_p),
                   pad2d(std_of("w2"), h_p, d_out_p).astype(jnp.bfloat16)),
            "b2": (pad_row(self.mean["b2"], d_out_p),
                   pad_row(std_of("b2"), d_out_p).astype(jnp.bfloat16)),
        }

        # Cached 128-padded bf16 forward weights (means until a sample is set).
        self._fwd = self._make_fwd_weights(self.mean)
        self.sampled = None

    # -- helpers -----------------------------------------------------------
    def _make_fwd_weights(self, p):
        d_in, h_dim, d_out = self._dims
        d_in_p, h_p, d_out_p = self._dims_p
        w1 = jnp.pad(p["w1"], ((0, d_in_p - d_in), (0, h_p - h_dim))).astype(jnp.bfloat16)
        b1 = jnp.pad(p["b1"], (0, h_p - h_dim)).reshape(1, h_p).astype(jnp.float32)
        w2 = jnp.pad(p["w2"], ((0, h_p - h_dim), (0, d_out_p - d_out))).astype(jnp.bfloat16)
        b2 = jnp.pad(p["b2"], (0, d_out_p - d_out)).reshape(1, d_out_p).astype(jnp.float32)
        return {"w1": w1, "b1": b1, "w2": w2, "b2": b2}

    def _unflatten(self, w_flat):
        out, off = {}, 0
        for n in self.names:
            size = self.sizes[n]
            out[n] = w_flat[off:off + size].reshape(self.param_shapes[n])
            off += size
        return out

    # -- SWAG API ------------------------------------------------------------
    def sample(self, seed, scale=1.0):
        # sample_fullrank(scale, cov=False): joint diagonal sample over the
        # flattened parameter vector.  eps drawn host-side (portable RNG).
        eps2d = jax.random.normal(jax.random.PRNGKey(seed),
                                  (self._rows, _LANE), dtype=jnp.float32)
        w_flat = swag_sample_flat(self._mean2d, self._std2d, eps2d, scale=scale)
        self.sampled = self._unflatten(w_flat[: self.total])
        # Cache padded bf16 weights once per sample; forward() then pays no
        # per-call pad/cast passes.
        self._fwd = self._make_fwd_weights(self.sampled)
        return self.sampled

    def forward(self, x):
        # SWAG.forward == base.forward with the currently-set (sampled) weights.
        f = self._fwd
        return mlp_forward(x, f["w1"], f["b1"], f["w2"], f["b2"], self._dims[2])

    def sample_and_forward(self, x, seed, scale=1.0, return_sample=True):
        # Fused `sample(); forward(x)` in a single kernel launch.  Note: eps is
        # consumed per-parameter here, so the same seed gives a different (but
        # equally valid) diagonal sample than sample().
        d_in_p, h_p, d_out_p = self._dims_p
        k1, k2, k3, k4 = jax.random.split(jax.random.PRNGKey(seed), 4)
        eps = {
            "w1": jax.random.normal(k1, (d_in_p, h_p), dtype=jnp.float32),
            "b1": jax.random.normal(k2, (1, h_p), dtype=jnp.float32),
            "w2": jax.random.normal(k3, (h_p, d_out_p), dtype=jnp.float32),
            "b2": jax.random.normal(k4, (1, d_out_p), dtype=jnp.float32),
        }
        y, sampled, padded = swag_fused_sample_forward(
            x, self._padded_stats, eps, self._dims,
            scale=scale, return_sample=return_sample)
        if return_sample:
            self.sampled = sampled
            self._fwd = {"w1": padded["w1"].astype(jnp.bfloat16),
                         "b1": padded["b1"],
                         "w2": padded["w2"].astype(jnp.bfloat16),
                         "b2": padded["b2"]}
        return y


if __name__ == "__main__":
    key = jax.random.PRNGKey(0)

    B, D_IN, H, D_OUT = 8, 32, 64, 16
    param_shapes = {
        "w1": (D_IN, H),   # transpose of PyTorch Linear weight [H, D_IN]
        "b1": (H,),
        "w2": (H, D_OUT),
        "b2": (D_OUT,),
    }

    key, k_init, k_x = jax.random.split(key, 3)
    swag = SWAGPallas(param_shapes, k_init, var_clamp=1e-30)
    x = jax.random.normal(k_x, (B, D_IN), dtype=jnp.float32)
    bf16 = jnp.bfloat16

    def ref_forward(p):
        h = jnp.dot(x.astype(bf16), p["w1"].astype(bf16),
                    preferred_element_type=jnp.float32) + p["b1"]
        h = jnp.maximum(h, 0.0)
        return jnp.dot(h.astype(bf16), p["w2"].astype(bf16),
                       preferred_element_type=jnp.float32) + p["b2"]

    # scale=0 sample must reproduce the SWAG means exactly (data-path check).
    s0 = swag.sample(seed=123, scale=0.0)
    for n in param_shapes:
        assert jnp.allclose(s0[n], swag.mean[n], atol=0.0, rtol=0.0)

    # Diagonal sample (kernel 1) + base-model forward (kernel 2).
    sampled = swag.sample(seed=7, scale=1.0)
    out = jax.block_until_ready(swag.forward(x))
    assert out.shape == (B, D_OUT)
    assert jnp.allclose(out, ref_forward(sampled), atol=2e-2, rtol=2e-2)

    # Implied eps should look like N(0,1) (loose sanity check on the sampling).
    names = list(param_shapes)
    w_flat = jnp.concatenate([sampled[n].reshape(-1) for n in names])
    m_flat = jnp.concatenate([swag.mean[n].reshape(-1) for n in names])
    v_flat = jnp.concatenate([swag.sq_mean[n].reshape(-1) for n in names]) - m_flat ** 2
    eps_imp = (w_flat - m_flat) / jnp.sqrt(jnp.maximum(v_flat, 1e-30))
    assert bool(jnp.all(jnp.isfinite(eps_imp)))
    assert abs(float(eps_imp.mean())) < 0.25
    assert 0.6 < float(eps_imp.std()) < 1.4

    # Fused sample + forward (kernel 3, single launch).
    y_fused = jax.block_until_ready(
        swag.sample_and_forward(x, seed=11, scale=1.0, return_sample=True))
    assert y_fused.shape == (B, D_OUT)
    assert jnp.allclose(y_fused, ref_forward(swag.sampled), atol=2e-2, rtol=2e-2)

    print("KERNEL_OK")
</pallas_src>

<mosaic_0001>
module attributes {stable_mosaic.version = 11 : i64} {
  func.func @swag_sample_kernel(%arg0: i32, %arg1: memref<32x128xf32, #tpu.memory_space<vmem>>, %arg2: memref<32x128xbf16, #tpu.memory_space<vmem>>, %arg3: memref<32x128xf32, #tpu.memory_space<vmem>>, %arg4: memref<32x128xf32, #tpu.memory_space<vmem>>) attributes {dimension_semantics = [#tpu.dimension_semantics<parallel>], iteration_bounds = array<i64: 1>, scalar_prefetch = 0 : i64, scratch_operands = 0 : i64, tpu.core_type = #tpu.core_type<tc>, window_params = [{transform_indices = @transform_0, window_bounds = array<i64: 32, 128>}, {transform_indices = @transform_1, window_bounds = array<i64: 32, 128>}, {transform_indices = @transform_2, window_bounds = array<i64: 32, 128>}, {transform_indices = @transform_3, window_bounds = array<i64: 32, 128>}]} {
    %c0 = arith.constant 0 : index
    %c0_0 = arith.constant 0 : index
    %0 = vector.load %arg1[%c0, %c0_0] : memref<32x128xf32, #tpu.memory_space<vmem>>, vector<32x128xf32>
    %c0_1 = arith.constant 0 : index
    %c0_2 = arith.constant 0 : index
    %1 = vector.load %arg2[%c0_1, %c0_2] : memref<32x128xbf16, #tpu.memory_space<vmem>>, vector<32x128xbf16>
    %2 = arith.extf %1 : vector<32x128xbf16> to vector<32x128xf32>
    %cst = arith.constant 0.000000e+00 : f32
    %3 = vector.broadcast %cst : f32 to vector<32x128xf32>
    %4 = arith.mulf %3, %2 : vector<32x128xf32>
    %c0_3 = arith.constant 0 : index
    %c0_4 = arith.constant 0 : index
    %5 = vector.load %arg3[%c0_3, %c0_4] : memref<32x128xf32, #tpu.memory_space<vmem>>, vector<32x128xf32>
    %6 = arith.mulf %4, %5 : vector<32x128xf32>
    %7 = arith.addf %0, %6 : vector<32x128xf32>
    %c0_5 = arith.constant 0 : index
    %c0_6 = arith.constant 0 : index
    %8 = vector.load %arg4[%c0_5, %c0_6] : memref<32x128xf32, #tpu.memory_space<vmem>>, vector<32x128xf32>
    tpu.vector_store %arg4[%c0_5, %c0_6], %7 {strides = array<i32>} : memref<32x128xf32, #tpu.memory_space<vmem>>, vector<32x128xf32>,
    return
  }
  func.func @transform_0(%arg0: i32) -> (i32, i32) {
    %c0_i32 = arith.constant 0 : i32
    %c0_i32_0 = arith.constant 0 : i32
    return %arg0, %c0_i32 : i32, i32
  }
  func.func @transform_1(%arg0: i32) -> (i32, i32) {
    %c0_i32 = arith.constant 0 : i32
    %c0_i32_0 = arith.constant 0 : i32
    return %arg0, %c0_i32 : i32, i32
  }
  func.func @transform_2(%arg0: i32) -> (i32, i32) {
    %c0_i32 = arith.constant 0 : i32
    %c0_i32_0 = arith.constant 0 : i32
    return %arg0, %c0_i32 : i32, i32
  }
  func.func @transform_3(%arg0: i32) -> (i32, i32) {
    %c0_i32 = arith.constant 0 : i32
    %c0_i32_0 = arith.constant 0 : i32
    return %arg0, %c0_i32 : i32, i32
  }
}

</mosaic_0001>

<bundles_post_ra>
// kernel: tpu_custom_call.1
= control target key start
LH: loop header
LB: loop body
LE: loop exit
PB: predicated region body
PF: predicated region fallthrough
CT: control target
= control target key end

     0   :  { %8 = vsyncpa [#allocation3], 0  ;;  %s282_s0 = inlined_call_operand.hbm [shape: f32[32,128], index: 0, kind: input, shape index: {}]   ;;  %s283_s1 = inlined_call_operand.hbm [shape: bf16[32,128], index: 1, kind: input, shape index: {}]   ;;  %s284_s2 = inlined_call_operand.hbm [shape: f32[32,128], index: 2, kind: input, shape index: {}]   ;;  %s285_s3 = inlined_call_operand.hbm [shape: f32[32,128], index: 3, kind: output, shape index: {}]  }
   0x1   :  { %9 = vsyncpa [#allocation6], 0  ;;  %s28_s14 = sshll.u32 %s283_s1, 4  ;;  %s29_s14 = int_to_ptr.hbm [resolvable:$true] %s28_s14 }
   0x2   :  { %10 = vsyncpa [#allocation4], 0  ;;  %s233_s15 = smov [#allocation5]   ;;  %s15_s19 = sshll.u32 %s282_s0, 4  ;;  %s16_s19 = int_to_ptr.hbm [resolvable:$true] %s15_s19 }
   0x3   :  { %s30_s16 = sshll.u32 %s233_s15, 4  ;;  %s234_s20 = smov 64   ;;  %s31_s16 = int_to_ptr.vmem [resolvable:$true] %s30_s16 }
   0x4   :  { %s235_s21 = smov 4   ;;  %s236_s22 = smov [#allocation2]  }
   0x5   :  { %36 = dma.hbm_to_vmem [thread:$0]  %s29_s14, 256, %s31_s16, [#allocation6], %s234_s20, %s234_s20, %s235_s21  }
   0x6   :  { %s17_s23 = sshll.u32 %s236_s22, 4  ;;  %s237_s24 = smov 128   ;;  %s18_s23 = int_to_ptr.vmem [resolvable:$true] %s17_s23 }
   0x7   :  { %s238_s25 = smov 8   ;;  %s41_s27 = sshll.u32 %s284_s2, 4  ;;  %s42_s27 = int_to_ptr.hbm [resolvable:$true] %s41_s27 }
   0x8   :  { %23 = dma.hbm_to_vmem [thread:$0]  %s16_s19, 512, %s18_s23, [#allocation3], %s237_s24, %s237_s24, %s238_s25  }
   0x9   :  { %s239_s28 = smov [#allocation7]  }
   0xa   :  { %s43_s0 = sshll.u32 %s239_s28, 4  ;;  %s44_s0 = int_to_ptr.vmem [resolvable:$true] %s43_s0 }
   0xb   :  { %49 = dma.hbm_to_vmem [thread:$0]  %s42_s27, 512, %s44_s0, [#allocation6], %s237_s24, %s237_s24, %s238_s25  }
   0xc   :  { %227 = dma.done.wait [#allocation3], 512  }
   0xd   :  { %228 = vsyncadd [#allocation3], 4294966784 }
   0xe   :  { %229 = dma.done.wait [#allocation6], 768  }
   0xf   :  { %230 = vsyncadd [#allocation6], 4294966528  ;;  %v115_v0 = vld [vmem:[#allocation5] sm:$0xff]   ;;  %v78_v3 = vld [vmem:[#allocation7] sm:$0xff]  ;;  %s240_s2 = smov [#allocation8]   ;;  %s100_s5 = sshll.u32 %s285_s3, 4  ;;  %s101_s5 = int_to_ptr.hbm [resolvable:$true] %s100_s5 }
  0x10   :  { %v116_v1 = vunpack.c.l.bf16 %v115_v0  ;;  %v117_v2 = vunpack.c.h.bf16 %v115_v0  ;;  %v79_v4 = vld [vmem:[#allocation7 + $0x8] sm:$0xff]  ;;  %v122_v5 = vld [vmem:[#allocation5 + $0x8] sm:$0xff]   ;;  %v62_v6 = vld [vmem:[#allocation2] sm:$0xff]  ;;  %s98_s29 = sshll.u32 %s240_s2, 4  ;;  %s99_s29 = int_to_ptr.vmem [resolvable:$true] %s98_s29 }
  0x11   :  { %v120_v9 = vunpack.c.l.bf16 %v122_v5  ;;  %v121_v10 = vunpack.c.h.bf16 %v122_v5  ;;  %v63_v11 = vld [vmem:[#allocation2 + $0x8] sm:$0xff]  ;;  %v80_v12 = vld [vmem:[#allocation7 + $0x10] sm:$0xff]  ;;  %v64_v18 = vld [vmem:[#allocation2 + $0x10] sm:$0xff] }
  0x12   :  { %v74_v7 = vmul.f32 0.0, %v116_v1  ;;  %v75_v8 = vmul.f32 0.0, %v117_v2  ;;  %v81_v13 = vld [vmem:[#allocation7 + $0x18] sm:$0xff]  ;;  %v65_v19 = vld [vmem:[#allocation2 + $0x18] sm:$0xff] }
  0x13   :  { %v76_v16 = vmul.f32 0.0, %v120_v9  ;;  %v77_v17 = vmul.f32 0.0, %v121_v10 }
  0x14   :  { %v82_v14 = vmul.f32 %v78_v3, %v74_v7  ;;  %v83_v15 = vmul.f32 %v79_v4, %v75_v8 }
  0x15   :  { %v84_v22 = vmul.f32 %v80_v12, %v76_v16  ;;  %v85_v23 = vmul.f32 %v81_v13, %v77_v17 }
  0x16   :  { %v86_v20 = vadd.f32 %v82_v14, %v62_v6  ;;  %v87_v21 = vadd.f32 %v83_v15, %v63_v11 }
  0x17   :  { %v88_v24 = vadd.f32 %v84_v22, %v64_v18  ;;  %v89_v25 = vadd.f32 %v85_v23, %v65_v19 }
  0x18   :  { %90 = vst [vmem:[#allocation8] sm:$0xff] %v86_v20 }
  0x19   :  { %91 = vst [vmem:[#allocation8 + $0x8] sm:$0xff] %v87_v21 }
  0x1a   :  { %92 = vst [vmem:[#allocation8 + $0x10] sm:$0xff] %v88_v24 }
  0x1b   :  { %93 = vst [vmem:[#allocation8 + $0x18] sm:$0xff] %v89_v25 }
  0x1c   :  { %106 = dma.vmem_to_hbm [thread:$0]  %s99_s29, 512, %s101_s5, [#allocation4], %s237_s24, %s237_s24, %s238_s25  }
  0x1d   :  { %231 = dma.done.wait [#allocation4], 512  }
  0x1e   :  { %232 = vsyncadd [#allocation4], 4294966784 }
  0x1f   :  { %111 = vsyncpa [#allocation3], 1 }
  0x20   :  { %112 = vsyncpa [#allocation6], 1 }
  0x21   :  { %113 = vsyncpa [#allocation4], 1 }

</bundles_post_ra>
